<compile_context>
chip_gen: v6e
topology: v6e:2x2x1
jax: 0.10.0
libtpu: 0.0.40
codegen_flags: <defaults>
</compile_context>

<pallas_src>
import jax
import jax.numpy as jnp
import numpy as np
from jax.experimental import pallas as pl
from jax.experimental.pallas import tpu as pltpu

_BN_EPS = 1e-5
_LANE_TILE = 512          # spatial positions per grid step (multiple of 128)

_COMPILER_PARAMS = pltpu.CompilerParams(
    dimension_semantics=("parallel",),           # megacore-shardable grid axis
    vmem_limit_bytes=32 * 1024 * 1024,           # explicit; v7x-safe headroom
)


def _round_up(x, m):
    return (x + m - 1) // m * m


# ----------------------------------------------------------------------------
# Pallas kernels
# ----------------------------------------------------------------------------
def _conv3x3_stats_kernel(w_ref, p_ref, o_ref, s_ref):
    """Lane-dense im2col matmul tile + per-tile BN partial sums.

    w_ref: (Cout_p, 9*Cin_p)  bf16 packed conv weight (resident across tiles)
    p_ref: (9*Cin_p, T)       bf16 im2col patch tile (T spatial positions on lanes)
    o_ref: (Cout_p, T)        f32 conv output tile
    s_ref: (1, Cout_p, 2)     f32 per-tile [sum, sum_of_squares] per channel
    """
    z = jnp.dot(w_ref[...], p_ref[...], preferred_element_type=jnp.float32)
    o_ref[...] = z
    # Partial statistics for training-mode BatchNorm (accumulated in f32;
    # padded spatial columns are exact zeros so they contribute nothing).
    s_ref[0] = jnp.concatenate(
        [jnp.sum(z, axis=1, keepdims=True),
         jnp.sum(z * z, axis=1, keepdims=True)], axis=1)


def _bn_relu_kernel(z_ref, sc_ref, sh_ref, o_ref):
    """y = relu(z * scale + shift).

    z_ref : (Cout_p, T)  f32 conv output tile
    sc_ref: (Cout_p, 1)  f32 per-channel scale  (gamma * rsqrt(var + eps))
    sh_ref: (Cout_p, 1)  f32 per-channel shift  (beta - mean * scale)
    o_ref : (Cout_p, T)  f32
    """
    o_ref[...] = jnp.maximum(z_ref[...] * sc_ref[...] + sh_ref[...], 0.0)


# ----------------------------------------------------------------------------
# One {conv3x3, BN(training stats), ReLU} layer
# ----------------------------------------------------------------------------
def _pack_weight(w, cin_p, cout_p):
    """(Cout, Cin, 3, 3) torch layout -> (Cout_p, 9*Cin_p); col = (ky*3+kx)*Cin_p + ci."""
    cout, cin = w.shape[0], w.shape[1]
    wt = jnp.transpose(w, (0, 2, 3, 1)).reshape(cout, 9, cin)     # [co, k, ci]
    wt = jnp.pad(wt, ((0, cout_p - cout), (0, 0), (0, cin_p - cin)))
    return wt.reshape(cout_p, 9 * cin_p)


def _conv_bn_relu_layer(act, w2_bf, gamma_p, beta_p, nhw, tile, eps):
    """act: (Cin_p, N, H, W) f32  ->  (Cout_p, N, H, W) f32."""
    cin_p, n, h, w = act.shape
    cout_p = w2_bf.shape[0]
    nhw_p = _round_up(nhw, tile)
    n_tiles = nhw_p // tile

    # --- im2col: 9 zero-padded tap shifts, tap-major over channels; spatial on lanes.
    xb = act.astype(jnp.bfloat16)                                  # bf16 MXU operands
    xp = jnp.pad(xb, ((0, 0), (0, 0), (1, 1), (1, 1)))
    taps = [xp[:, :, ky:ky + h, kx:kx + w] for ky in range(3) for kx in range(3)]
    patches = jnp.stack(taps, axis=0).reshape(9 * cin_p, nhw)
    patches = jnp.pad(patches, ((0, 0), (0, nhw_p - nhw)))

    # --- pass 1: conv (single MXU matmul per tile) + per-tile BN partials.
    conv, stats = pl.pallas_call(
        _conv3x3_stats_kernel,
        out_shape=(jax.ShapeDtypeStruct((cout_p, nhw_p), jnp.float32),
                   jax.ShapeDtypeStruct((n_tiles, cout_p, 2), jnp.float32)),
        grid_spec=pltpu.PrefetchScalarGridSpec(
            num_scalar_prefetch=0,
            grid=(n_tiles,),
            in_specs=[pl.BlockSpec((cout_p, 9 * cin_p), lambda i: (0, 0)),
                      pl.BlockSpec((9 * cin_p, tile), lambda i: (0, i))],
            out_specs=(pl.BlockSpec((cout_p, tile), lambda i: (0, i)),
                       pl.BlockSpec((1, cout_p, 2), lambda i: (i, 0, 0)))),
        compiler_params=_COMPILER_PARAMS,
    )(w2_bf, patches)

    # --- finalize exact full-batch training-mode BN stats (tiny XLA ops).
    s = jnp.sum(stats, axis=0)                                     # (Cout_p, 2)
    mean = s[:, 0] / nhw
    var = jnp.maximum(s[:, 1] / nhw - mean * mean, 0.0)            # biased var, f32
    scale = gamma_p * jax.lax.rsqrt(var + eps)
    shift = beta_p - mean * scale

    # --- pass 2: normalize + ReLU (lane-dense, gridded, parallel).
    y = pl.pallas_call(
        _bn_relu_kernel,
        out_shape=jax.ShapeDtypeStruct((cout_p, nhw_p), jnp.float32),
        grid_spec=pltpu.PrefetchScalarGridSpec(
            num_scalar_prefetch=0,
            grid=(n_tiles,),
            in_specs=[pl.BlockSpec((cout_p, tile), lambda i: (0, i)),
                      pl.BlockSpec((cout_p, 1), lambda i: (0, 0)),
                      pl.BlockSpec((cout_p, 1), lambda i: (0, 0))],
            out_specs=pl.BlockSpec((cout_p, tile), lambda i: (0, i))),
        compiler_params=_COMPILER_PARAMS,
    )(conv, scale[:, None], shift[:, None])

    return y[:, :nhw].reshape(cout_p, n, h, w)


# ----------------------------------------------------------------------------
# Forward pass (NCHW in / NCHW out, PyTorch semantics)
# ----------------------------------------------------------------------------
def triple_conv_forward(params, x_nchw, eps=_BN_EPS, tile=_LANE_TILE):
    x = x_nchw.astype(jnp.float32)
    n, cin, h, w = x.shape
    cout = params["w1"].shape[0]
    cin_p = _round_up(cin, 8)
    cout_p = _round_up(cout, 8)
    nhw = n * h * w
    tile = min(tile, _round_up(nhw, 128))

    # channel-major activation layout (C, N, H, W); pad channels to sublane mult.
    act = jnp.transpose(x, (1, 0, 2, 3))
    act = jnp.pad(act, ((0, cin_p - cin), (0, 0), (0, 0), (0, 0)))

    def pad_vec(v):
        return jnp.pad(v, (0, cout_p - cout))

    layer_cin_p = (cin_p, cout_p, cout_p)
    for li, ci_p in zip((1, 2, 3), layer_cin_p):
        w2 = _pack_weight(params[f"w{li}"], ci_p, cout_p).astype(jnp.bfloat16)
        # NOTE: conv bias b{li} intentionally omitted — cancelled exactly by the
        # training-mode BN mean subtraction that follows.
        act = _conv_bn_relu_layer(act, w2, pad_vec(params[f"g{li}"]),
                                  pad_vec(params[f"bt{li}"]), nhw, tile, eps)

    out = act[:cout]                                               # (Cout, N, H, W)
    return jnp.transpose(out, (1, 0, 2, 3))                        # NCHW


# ----------------------------------------------------------------------------
# Deterministic parameter initialization (PyTorch-like shapes & defaults)
# ----------------------------------------------------------------------------
def init_params(key, in_chan, out_chan):
    ks = jax.random.split(key, 6)

    def u(k, shape, fan_in):
        bound = 1.0 / float(np.sqrt(fan_in))
        return jax.random.uniform(k, shape, jnp.float32, -bound, bound)

    p = {}
    cins = (in_chan, out_chan, out_chan)
    for i, ci in enumerate(cins, start=1):
        p[f"w{i}"] = u(ks[2 * (i - 1)], (out_chan, ci, 3, 3), ci * 9)
        p[f"b{i}"] = u(ks[2 * (i - 1) + 1], (out_chan,), ci * 9)
        p[f"g{i}"] = jnp.ones((out_chan,), jnp.float32)    # BN gamma
        p[f"bt{i}"] = jnp.zeros((out_chan,), jnp.float32)  # BN beta
    return p


# ----------------------------------------------------------------------------
# Pure-JAX reference (in-script correctness check only)
# ----------------------------------------------------------------------------
def reference_forward(params, x_nchw, eps=_BN_EPS):
    x = x_nchw.astype(jnp.float32)

    def cbr(x, w, b, g, beta):
        # Round conv operands through bf16 to mirror the MXU bf16xbf16->f32 path.
        xb = x.astype(jnp.bfloat16).astype(jnp.float32)
        wb = w.astype(jnp.bfloat16).astype(jnp.float32)
        y = jax.lax.conv_general_dilated(
            xb, wb, (1, 1), "SAME",
            dimension_numbers=("NCHW", "OIHW", "NCHW"),
            precision=jax.lax.Precision.HIGHEST) + b[None, :, None, None]
        m = jnp.mean(y, axis=(0, 2, 3), keepdims=True)
        v = jnp.mean((y - m) ** 2, axis=(0, 2, 3), keepdims=True)
        return jnp.maximum((y - m) * jax.lax.rsqrt(v + eps) * g[None, :, None, None]
                           + beta[None, :, None, None], 0.0)

    for i in (1, 2, 3):
        x = cbr(x, params[f"w{i}"], params[f"b{i}"], params[f"g{i}"], params[f"bt{i}"])
    return x


# ----------------------------------------------------------------------------
if __name__ == "__main__":
    in_chan, out_chan = 3, 6        # exercises channel padding (3->8, 6->8)
    N, H, W = 2, 20, 20             # N*H*W = 800 -> padded to 1024 -> 2 tiles of 512

    key = jax.random.PRNGKey(0)
    kp, kx = jax.random.split(key)
    params = init_params(kp, in_chan, out_chan)
    x = jax.random.normal(kx, (N, in_chan, H, W), jnp.float32)

    fwd = jax.jit(triple_conv_forward)
    out = jax.block_until_ready(fwd(params, x))
    ref = jax.block_until_ready(reference_forward(params, x))

    assert out.shape == (N, out_chan, H, W), out.shape
    # Tolerance accounts for bf16 MXU operands across three stacked layers.
    np.testing.assert_allclose(np.asarray(out), np.asarray(ref),
                               rtol=5e-3, atol=5e-3)
    print("KERNEL_OK")
</pallas_src>

<mosaic_0001>
module attributes {stable_mosaic.version = 11 : i64} {
  func.func @_conv3x3_stats_kernel(%arg0: i32, %arg1: memref<8x72xbf16, #tpu.memory_space<vmem>>, %arg2: memref<72x512xbf16, #tpu.memory_space<vmem>>, %arg3: memref<8x512xf32, #tpu.memory_space<vmem>>, %arg4: memref<1x8x2xf32, #tpu.memory_space<vmem>>) attributes {dimension_semantics = [#tpu.dimension_semantics<parallel>], iteration_bounds = array<i64: 2>, scalar_prefetch = 0 : i64, scratch_operands = 0 : i64, tpu.core_type = #tpu.core_type<tc>, window_params = [{pipeline_mode = #tpu.pipeline_mode<synchronous>, transform_indices = @transform_0, window_bounds = array<i64: 8, 72>}, {transform_indices = @transform_1, window_bounds = array<i64: 72, 512>}, {transform_indices = @transform_2, window_bounds = array<i64: 8, 512>}, {transform_indices = @transform_3, window_bounds = array<i64: 1, 8, 2>}]} {
    %c0 = arith.constant 0 : index
    %c0_0 = arith.constant 0 : index
    %0 = vector.load %arg1[%c0, %c0_0] : memref<8x72xbf16, #tpu.memory_space<vmem>>, vector<8x72xbf16>
    %c0_1 = arith.constant 0 : index
    %c0_2 = arith.constant 0 : index
    %1 = vector.load %arg2[%c0_1, %c0_2] : memref<72x512xbf16, #tpu.memory_space<vmem>>, vector<72x512xbf16>
    %cst = arith.constant dense<0.000000e+00> : vector<8x512xf32>
    %2 = tpu.matmul %0, %1, %cst {dimension_numbers = #tpu.dot_dimension_numbers<[1], [0], [0], [1], [0, 0, 1, 1], [], []>} : vector<8x72xbf16>, vector<72x512xbf16>, vector<8x512xf32> -> vector<8x512xf32>
    %c0_3 = arith.constant 0 : index
    %c0_4 = arith.constant 0 : index
    %3 = vector.load %arg3[%c0_3, %c0_4] : memref<8x512xf32, #tpu.memory_space<vmem>>, vector<8x512xf32>
    tpu.vector_store %arg3[%c0_3, %c0_4], %2 {strides = array<i32>} : memref<8x512xf32, #tpu.memory_space<vmem>>, vector<8x512xf32>,
    %cst_5 = arith.constant dense<0.000000e+00> : vector<8xf32>
    %4 = vector.multi_reduction <add>, %2, %cst_5 [1] : vector<8x512xf32> to vector<8xf32>
    %5 = vector.shape_cast %4 : vector<8xf32> to vector<8x1xf32>
    %6 = arith.mulf %2, %2 : vector<8x512xf32>
    %cst_6 = arith.constant dense<0.000000e+00> : vector<8xf32>
    %7 = vector.multi_reduction <add>, %6, %cst_6 [1] : vector<8x512xf32> to vector<8xf32>
    %8 = vector.shape_cast %7 : vector<8xf32> to vector<8x1xf32>
    %9 = tpu.concatenate %5, %8 in 1 : vector<8x1xf32>, vector<8x1xf32> -> vector<8x2xf32>
    %c0_7 = arith.constant 0 : index
    %c0_8 = arith.constant 0 : index
    %c0_9 = arith.constant 0 : index
    %10 = vector.load %arg4[%c0_7, %c0_8, %c0_9] : memref<1x8x2xf32, #tpu.memory_space<vmem>>, vector<1x8x2xf32>
    %11 = vector.shape_cast %10 : vector<1x8x2xf32> to vector<8x2xf32>
    %12 = vector.shape_cast %9 : vector<8x2xf32> to vector<1x8x2xf32>
    tpu.vector_store %arg4[%c0_7, %c0_8, %c0_9], %12 {strides = array<i32>} : memref<1x8x2xf32, #tpu.memory_space<vmem>>, vector<1x8x2xf32>,
    return
  }
  func.func @transform_0(%arg0: i32) -> (i32, i32) {
    %c0_i32 = arith.constant 0 : i32
    %c0_i32_0 = arith.constant 0 : i32
    %c0_i32_1 = arith.constant 0 : i32
    return %c0_i32, %c0_i32_0 : i32, i32
  }
  func.func @transform_1(%arg0: i32) -> (i32, i32) {
    %c0_i32 = arith.constant 0 : i32
    %c0_i32_0 = arith.constant 0 : i32
    return %c0_i32, %arg0 : i32, i32
  }
  func.func @transform_2(%arg0: i32) -> (i32, i32) {
    %c0_i32 = arith.constant 0 : i32
    %c0_i32_0 = arith.constant 0 : i32
    return %c0_i32, %arg0 : i32, i32
  }
  func.func @transform_3(%arg0: i32) -> (i32, i32, i32) {
    %c0_i32 = arith.constant 0 : i32
    %c0_i32_0 = arith.constant 0 : i32
    %c0_i32_1 = arith.constant 0 : i32
    return %arg0, %c0_i32, %c0_i32_0 : i32, i32, i32
  }
}

module attributes {stable_mosaic.version = 11 : i64} {
  func.func @_bn_relu_kernel(%arg0: i32, %arg1: memref<8x512xf32, #tpu.memory_space<vmem>>, %arg2: memref<8x1xf32, #tpu.memory_space<vmem>>, %arg3: memref<8x1xf32, #tpu.memory_space<vmem>>, %arg4: memref<8x512xf32, #tpu.memory_space<vmem>>) attributes {dimension_semantics = [#tpu.dimension_semantics<parallel>], iteration_bounds = array<i64: 2>, scalar_prefetch = 0 : i64, scratch_operands = 0 : i64, tpu.core_type = #tpu.core_type<tc>, window_params = [{transform_indices = @transform_0, window_bounds = array<i64: 8, 512>}, {pipeline_mode = #tpu.pipeline_mode<synchronous>, transform_indices = @transform_1, window_bounds = array<i64: 8, 1>}, {pipeline_mode = #tpu.pipeline_mode<synchronous>, transform_indices = @transform_2, window_bounds = array<i64: 8, 1>}, {transform_indices = @transform_3, window_bounds = array<i64: 8, 512>}]} {
    %c0 = arith.constant 0 : index
    %c0_0 = arith.constant 0 : index
    %0 = vector.load %arg1[%c0, %c0_0] : memref<8x512xf32, #tpu.memory_space<vmem>>, vector<8x512xf32>
    %c0_1 = arith.constant 0 : index
    %c0_2 = arith.constant 0 : index
    %1 = vector.load %arg2[%c0_1, %c0_2] : memref<8x1xf32, #tpu.memory_space<vmem>>, vector<8x1xf32>
    %2 = vector.broadcast %1 : vector<8x1xf32> to vector<8x512xf32>
    %3 = arith.mulf %0, %2 : vector<8x512xf32>
    %c0_3 = arith.constant 0 : index
    %c0_4 = arith.constant 0 : index
    %4 = vector.load %arg3[%c0_3, %c0_4] : memref<8x1xf32, #tpu.memory_space<vmem>>, vector<8x1xf32>
    %5 = vector.broadcast %4 : vector<8x1xf32> to vector<8x512xf32>
    %6 = arith.addf %3, %5 : vector<8x512xf32>
    %cst = arith.constant 0.000000e+00 : f32
    %7 = vector.broadcast %cst : f32 to vector<8x512xf32>
    %8 = arith.maximumf %6, %7 : vector<8x512xf32>
    %c0_5 = arith.constant 0 : index
    %c0_6 = arith.constant 0 : index
    %9 = vector.load %arg4[%c0_5, %c0_6] : memref<8x512xf32, #tpu.memory_space<vmem>>, vector<8x512xf32>
    tpu.vector_store %arg4[%c0_5, %c0_6], %8 {strides = array<i32>} : memref<8x512xf32, #tpu.memory_space<vmem>>, vector<8x512xf32>,
    return
  }
  func.func @transform_0(%arg0: i32) -> (i32, i32) {
    %c0_i32 = arith.constant 0 : i32
    %c0_i32_0 = arith.constant 0 : i32
    return %c0_i32, %arg0 : i32, i32
  }
  func.func @transform_1(%arg0: i32) -> (i32, i32) {
    %c0_i32 = arith.constant 0 : i32
    %c0_i32_0 = arith.constant 0 : i32
    %c0_i32_1 = arith.constant 0 : i32
    return %c0_i32, %c0_i32_0 : i32, i32
  }
  func.func @transform_2(%arg0: i32) -> (i32, i32) {
    %c0_i32 = arith.constant 0 : i32
    %c0_i32_0 = arith.constant 0 : i32
    %c0_i32_1 = arith.constant 0 : i32
    return %c0_i32, %c0_i32_0 : i32, i32
  }
  func.func @transform_3(%arg0: i32) -> (i32, i32) {
    %c0_i32 = arith.constant 0 : i32
    %c0_i32_0 = arith.constant 0 : i32
    return %c0_i32, %arg0 : i32, i32
  }
}

</mosaic_0001>

<bundles_post_ra>
// kernel: triple_conv_forward.7
= control target key start
LH: loop header
LB: loop body
LE: loop exit
PB: predicated region body
PF: predicated region fallthrough
CT: control target
= control target key end

     0   :  { %s312_s12 = smov 0   ;;  %s335_s0 = inlined_call_operand.vmem [shape: f32[8,1024], index: 0, kind: input, shape index: {}]   ;;  %s336_s1 = inlined_call_operand.vmem [shape: f32[8,1], index: 1, kind: input, shape index: {}]   ;;  %s337_s2 = inlined_call_operand.vmem [shape: f32[8,1], index: 2, kind: input, shape index: {}]   ;;  %s338_s3 = inlined_call_operand.vmem [shape: f32[8,1024], index: 3, kind: output, shape index: {}]  }
   0x1 LB: > { %s262_s13 = sadd.s32 4294967295, %s289_s12   ;;  %p266_p0 = scmp.ge.s32.totalorder %s289_s12, 1  ;;  %s289_s12 = sphi %s312_s12, %s13_s12  }
   0x2   : > { %p138_p1 = scmp.lt.s32.totalorder %s289_s12, 3 }
   0x4   : > { %p139_p2 = pnand %p266_p0, %p138_p1 }
   0x5   : > { %s267_s18 = sshll.u32 (!%p139_p2), %s262_s13, 2 }
   0x6   : > { %142 = sbr.rel (%p139_p2) target bundleno = 147 (0x93), region = 32  ;;  %p163_p3 = scmp.lt.s32.totalorder (!%p139_p2), %s267_s18, 7 }
   0xb   : > { %v178_v0 = vld [vmem:[%s336_s1] sm:$0xff]  ;;  %v291_v1 = vmov 0   ;;  %s340_s18 = smov (!%p163_p3, %s267_s18), 7 }
   0xc   : > { %282 = vset.pattern.permute.xlu0 %v291_v1  ;;  %v188_v2 = vld [vmem:[%s337_s2] sm:$0xff]  ;;  %s268_s19 = sshll.u32 %s340_s18, 3 }
   0xd   : > { %181 = vperm.xlu0 %282, %v178_v0   ;;  %s166_s22 = scalar_lea.vmem %s335_s0, %s268_s19  ;;  %s172_s25 = scalar_lea.vmem %s338_s3, %s268_s19 }
   0xe   : > { %v174_v4 = vld [vmem:[%s166_s22] sm:$0xff]  ;;  %v175_v5 = vld [vmem:[%s166_s22 + $0x8] sm:$0xff]  ;;  %v176_v6 = vld [vmem:[%s166_s22 + $0x10] sm:$0xff] }
   0xf   : > { %v177_v7 = vld [vmem:[%s166_s22 + $0x18] sm:$0xff] }
  0x11   : > { %191 = vperm.xlu0 %282, %v188_v2  }
  0x88   : > { %v182_v3 = vpop.permute.xlu0 %181 }
  0x89   : > { %v184_v8 = vmul.f32 %v182_v3, %v174_v4  ;;  %v185_v9 = vmul.f32 %v182_v3, %v175_v5  ;;  %v186_v10 = vmul.f32 %v182_v3, %v176_v6  ;;  %v187_v12 = vmul.f32 %v182_v3, %v177_v7 }
  0x8c   : > { %v192_v11 = vpop.permute.xlu0 %191 }
  0x8d   : > { %v194_v13 = vadd.f32 %v192_v11, %v184_v8  ;;  %v195_v14 = vadd.f32 %v192_v11, %v185_v9  ;;  %v196_v15 = vadd.f32 %v192_v11, %v186_v10  ;;  %v197_v16 = vadd.f32 %v192_v11, %v187_v12 }
  0x8f   : > { %v198_v17 = vmax.f32 %v194_v13, 0.0  ;;  %v199_v18 = vmax.f32 %v195_v14, 0.0  ;;  %v200_v19 = vmax.f32 %v196_v15, 0.0  ;;  %v201_v20 = vmax.f32 %v197_v16, 0.0 }
  0x91   : > { %202 = vst [vmem:[%s172_s25] sm:$0xff] %v198_v17  ;;  %203 = vst [vmem:[%s172_s25 + $0x8] sm:$0xff] %v199_v18 }
  0x92   : > { %204 = vst [vmem:[%s172_s25 + $0x10] sm:$0xff] %v200_v19  ;;  %205 = vst [vmem:[%s172_s25 + $0x18] sm:$0xff] %v201_v20 }
  0x93 PF: > { %s13_s12 = sadd.s32 1, %s289_s12  }
  0x94   : > { %p10_p4 = scmp.ge.s32.totalorder %s13_s12, 4  }
  0x96   :  { %12 = sbr.rel (!%p10_p4) target bundleno = 1 (0x1), region = 62 }

// kernel: triple_conv_forward.6
= control target key start
LH: loop header
LB: loop body
LE: loop exit
PB: predicated region body
PF: predicated region fallthrough
CT: control target
= control target key end

     0   :  { %s699_s12 = smov 0   ;;  %s701_s13 = smov 0   ;;  %s800_s0 = inlined_call_operand.vmem [shape: bf16[8,72], index: 0, kind: input, shape index: {}]   ;;  %s801_s1 = inlined_call_operand.vmem [shape: bf16[72,1024], index: 1, kind: input, shape index: {}]   ;;  %s802_s2 = inlined_call_operand.vmem [shape: f32[8,1024], index: 2, kind: output, shape index: {0}]   ;;  %s803_s3 = inlined_call_operand.vmem [shape: f32[2,8,2], index: 3, kind: output, shape index: {1}]  }
   0x1   :  { %s703_s14 = smov 0  }
   0x2 LB: > { %s715_s15 = sadd.s32 4294967295, %s676_s14   ;;  %s718_s16 = sadd.s32 1, %s676_s14   ;;  %s676_s14 = sphi %s703_s14, %s806_s14   ;;  %s672_s13 = sphi %s701_s13, %s805_s13   ;;  %s668_s12 = sphi %s699_s12, %s804_s12  }
   0x3   : > { %s39_s17 = ssub.s32 %s676_s14, %s718_s16  ;;  %s42_s18 = sadd.s32 1, %s672_s13 }
   0x4   : > { %p40_p0 = scmp.eq.s32.totalorder %s39_s17, 0  ;;  %p49_p1 = scmp.ne.s32.totalorder %s672_s13, %s668_s12 }
   0x5   : > { %p50_p2 = scmp.eq.s32.totalorder %s676_s14, 0  ;;  %p565_p4 = scmp.ge.s32.totalorder %s676_s14, 2 }
   0x6   : > { %s727_s19 = scalar_select %p40_p0, %s672_s13, %s42_s18  }
   0x7   : > { %p51_p3 = por %p50_p2, %p49_p1  ;;  %130 = sbr.rel (%p565_p4) target bundleno = 25 (0x19), region = 20 }
   0xc   : > { %133 = sbr.rel (!%p51_p3) target bundleno = 25 (0x19), region = 24  ;;  %s135_s20 = sand.u32 (%p51_p3), 1, %s672_s13  }
   0xd   : > { %s598_s21 = sshll.u32 (%p51_p3), %s676_s14, 4  ;;  %s599_s22 = smul.u32 (%p51_p3), 144, %s135_s20 }
   0xe   : > { %s735_s25 = scalar_lea.vmem (%p51_p3), %s801_s1, %s598_s21 }
   0xf   : > { %v153_v0 = vld [vmem:[%s735_s25] sm:$0xff] (%p51_p3)  ;;  %v155_v1 = vld [vmem:[%s735_s25 + $0x8] sm:$0xff] (%p51_p3)  ;;  %s137_s26 = scalar_lea.vmem (%p51_p3), [#allocation2], %s599_s22 }
  0x10   : > { %v157_v2 = vld [vmem:[%s735_s25 + $0x20] sm:$0xff] (%p51_p3)  ;;  %v159_v3 = vld [vmem:[%s735_s25 + $0x28] sm:$0xff] (%p51_p3)  ;;  %154 = vst [vmem:[%s137_s26] sm:$0xff] (%p51_p3), %v153_v0  ;;  %156 = vst [vmem:[%s137_s26 + $0x8] sm:$0xff] (%p51_p3), %v155_v1 }
  0x11   : > { %v161_v4 = vld [vmem:[%s735_s25 + $0x40] sm:$0xff]  ;;  %v163_v5 = vld [vmem:[%s735_s25 + $0x48] sm:$0xff]  ;;  %158 = vst [vmem:[%s137_s26 + $0x10] sm:$0xff] %v157_v2  ;;  %160 = vst [vmem:[%s137_s26 + $0x18] sm:$0xff] %v159_v3 }
  0x12   : > { %162 = vst [vmem:[%s137_s26 + $0x20] sm:$0xff] %v161_v4  ;;  %164 = vst [vmem:[%s137_s26 + $0x28] sm:$0xff] %v163_v5  ;;  %v165_v6 = vld [vmem:[%s735_s25 + $0x60] sm:$0xff]  ;;  %v167_v7 = vld [vmem:[%s735_s25 + $0x68] sm:$0xff] }
  0x13   : > { %v169_v8 = vld [vmem:[%s735_s25 + $0x80] sm:$0xff]  ;;  %166 = vst [vmem:[%s137_s26 + $0x30] sm:$0xff] %v165_v6  ;;  %168 = vst [vmem:[%s137_s26 + $0x38] sm:$0xff] %v167_v7  ;;  %v171_v9 = vld [vmem:[%s735_s25 + $0x88] sm:$0xff] }
  0x14   : > { %170 = vst [vmem:[%s137_s26 + $0x40] sm:$0xff] %v169_v8  ;;  %v173_v10 = vld [vmem:[%s735_s25 + $0xa0] sm:$0xff]  ;;  %v175_v11 = vld [vmem:[%s735_s25 + $0xa8] sm:$0xff]  ;;  %172 = vst [vmem:[%s137_s26 + $0x48] sm:$0xff] %v171_v9 }
  0x15   : > { %174 = vst [vmem:[%s137_s26 + $0x50] sm:$0xff] %v173_v10  ;;  %176 = vst [vmem:[%s137_s26 + $0x58] sm:$0xff] %v175_v11  ;;  %v177_v12 = vld [vmem:[%s735_s25 + $0xc0] sm:$0xff]  ;;  %v179_v13 = vld [vmem:[%s735_s25 + $0xc8] sm:$0xff] }
  0x16   : > { %v181_v14 = vld [vmem:[%s735_s25 + $0xe0] sm:$0xff]  ;;  %178 = vst [vmem:[%s137_s26 + $0x60] sm:$0xff] %v177_v12  ;;  %180 = vst [vmem:[%s137_s26 + $0x68] sm:$0xff] %v179_v13  ;;  %v183_v15 = vld [vmem:[%s735_s25 + $0xe8] sm:$0xff] }
  0x17   : > { %182 = vst [vmem:[%s137_s26 + $0x70] sm:$0xff] %v181_v14  ;;  %v185_v16 = vld [vmem:[%s735_s25 + $0x100] sm:$0xff]  ;;  %v187_v17 = vld [vmem:[%s735_s25 + $0x108] sm:$0xff]  ;;  %184 = vst [vmem:[%s137_s26 + $0x78] sm:$0xff] %v183_v15 }
  0x18   : > { %186 = vst [vmem:[%s137_s26 + $0x80] sm:$0xff] %v185_v16  ;;  %188 = vst [vmem:[%s137_s26 + $0x88] sm:$0xff] %v187_v17 }
  0x19 PF: > { %p568_p5 = scmp.ge.s32.totalorder %s676_s14, 1  ;;  %p193_p6 = scmp.lt.s32.totalorder %s676_s14, 3 }
  0x1b   : > { %p194_p7 = pnand %p568_p5, %p193_p6 }
  0x1c   : > { %s200_s27 = sand.u32 (!%p194_p7), 1, %s668_s12   ;;  %s569_s5 = sshll.u32 (!%p194_p7), %s715_s15, 2 }
  0x1d   : > { %197 = sbr.rel (%p194_p7) target bundleno = 402 (0x192), region = 47  ;;  %p229_p8 = scmp.lt.s32.totalorder (!%p194_p7), %s569_s5, 7 }
  0x1e   : > { %s600_s28 = smul.u32 (!%p194_p7), 144, %s200_s27  ;;  %p234_p9 = scmp.lt.s32.totalorder (!%p194_p7), %s715_s15, 1 }
  0x20   : > { %s758_s29 = scalar_lea.vmem (!%p194_p7), [#allocation2], %s600_s28 }
  0x22   : > { %v678_v18 = vmov 0   ;;  %v256_v19 = vld [vmem:[%s758_s29 + $0x80] sm:$0xff]  ;;  %vm352_vm0 = vcmask 1043456   ;;  %v257_v20 = vld [vmem:[%s758_s29 + $0x88] sm:$0xff]  ;;  %vm348_vm1 = vcmask 588800   ;;  %s808_s5 = smov (!%p229_p8, %s569_s5), 7 }
  0x23   : > { %397 = vmatprep.mubr.bf16.mxu0 %v678_v18  ;;  %438 = vmatprep.mubr.bf16.mxu1 %v678_v18  ;;  %v589_v21 = vcombine.high %v256_v19, %v256_v19  ;;  %v591_v22 = vcombine.high %v257_v20, %v257_v20  ;;  %v588_v23 = vcombine.low %v256_v19, %v256_v19  ;;  %v630_v25 = vld [vmem:[%s758_s29 + $0x64] ss:$16 sps:$4 sm:$0xff]   ;;  %v632_v26 = vld [vmem:[%s758_s29 + $0x6c] ss:$16 sps:$4 sm:$0xff]   ;;  %v634_v29 = vld [vmem:[%s758_s29 + $0x60] ss:$16 sps:$4 sm:$0xff]  }
  0x24   : > { %v590_v24 = vcombine.low %v257_v20, %v257_v20  ;;  %v635_v30 = vld [vmem:[%s758_s29 + $0x68] ss:$16 sps:$4 sm:$0xff]   ;;  %v636_v31 = vld [vmem:[%s758_s29 + $0x44] ss:$16 sps:$4 sm:$0xff]   ;;  %v638_v32 = vld [vmem:[%s758_s29 + $0x4c] ss:$16 sps:$4 sm:$0xff]  }
  0x25   : > { %592 = vmatprep.subr.msk.bf16.mxu0 %vm352_vm0, %v589_v21  ;;  %594 = vmatprep.subr.msk.bf16.mxu1 %vm352_vm0, %v591_v22  ;;  %v354_v27 = vsel %vm352_vm0, %v588_v23, 0  ;;  %v640_v33 = vld [vmem:[%s758_s29 + $0x40] ss:$16 sps:$4 sm:$0xff]   ;;  %v641_v34 = vld [vmem:[%s758_s29 + $0x48] ss:$16 sps:$4 sm:$0xff]   ;;  %s570_s6 = sshll.u32 %s808_s5, 3 }
  0x26   : > { %v360_v28 = vsel %vm352_vm0, %v590_v24, 0  ;;  %372 = vmatpush1.bf16.msra.mxu0 %v354_v27  ;;  %v642_v35 = vld [vmem:[%s758_s29 + $0x24] ss:$16 sps:$4 sm:$0xff]   ;;  %v644_v36 = vld [vmem:[%s758_s29 + $0x2c] ss:$16 sps:$4 sm:$0xff]   ;;  %s232_s9 = scalar_lea.vmem %s802_s2, %s570_s6  ;;  %s810_s15 = smov (!%p234_p9, %s715_s15), 1 }
  0x27   : > { %413 = vmatpush1.bf16.msra.mxu1 %v360_v28  ;;  %373 = vmatprep.subr.bf16.mxu0 %v630_v25  ;;  %v646_v37 = vld [vmem:[%s758_s29 + $0x20] ss:$16 sps:$4 sm:$0xff]   ;;  %v647_v38 = vld [vmem:[%s758_s29 + $0x28] ss:$16 sps:$4 sm:$0xff]   ;;  %v648_v39 = vld [vmem:[%s758_s29 + $0x4] ss:$16 sps:$4 sm:$0xff]  }
  0x28   : > { %414 = vmatprep.subr.bf16.mxu1 %v632_v26  ;;  %v650_v40 = vld [vmem:[%s758_s29 + $0xc] ss:$16 sps:$4 sm:$0xff]   ;;  %v652_v41 = vld [vmem:[%s758_s29] ss:$16 sps:$4 sm:$0xff]   ;;  %v653_v42 = vld [vmem:[%s758_s29 + $0x8] ss:$16 sps:$4 sm:$0xff]  }
  0x29   : > { %v239_v43 = vld [vmem:[%s800_s0] sm:$0xf]  ;;  %s571_s10 = sshll.u32 %s810_s15, 3  ;;  %vm465_vm2 = vcmask 7168   ;;  %vm467_vm3 = vcmask 15360  }
  0x2a   : > { %374 = vmatpush1.bf16.msra.mxu0 %v634_v29  ;;  %s237_s14 = scalar_lea.vmem %s803_s3, %s571_s10 }
  0x2b   : > { %415 = vmatpush1.bf16.msra.mxu1 %v635_v30  ;;  %375 = vmatprep.subr.bf16.mxu0 %v636_v31 }
  0x2c   : > { %416 = vmatprep.subr.bf16.mxu1 %v638_v32 }
  0x2e   : > { %376 = vmatpush1.bf16.msra.mxu0 %v640_v33 }
  0x2f   : > { %417 = vmatpush1.bf16.msra.mxu1 %v641_v34  ;;  %377 = vmatprep.subr.bf16.mxu0 %v642_v35 }
  0x30   : > { %418 = vmatprep.subr.bf16.mxu1 %v644_v36 }
  0x32   : > { %378 = vmatpush1.bf16.msra.mxu0 %v646_v37 }
  0x33   : > { %419 = vmatpush1.bf16.msra.mxu1 %v647_v38  ;;  %379 = vmatprep.subr.bf16.mxu0 %v648_v39 }
  0x34   : > { %420 = vmatprep.subr.bf16.mxu1 %v650_v40 }
  0x36   : > { %380 = vmatpush1.bf16.msra.mxu0 %v652_v41 }
  0x37   : > { %421 = vmatpush1.bf16.msra.mxu1 %v653_v42 }
  0x39   : > { %593 = vmatmul.mubr.msk.bf16.vlgmr.msra.gmra.mxu0 %vm348_vm1, %v239_v43 }
  0x3a   : > { %595 = vmatmul.mubr.msk.bf16.vlgmr.msra.gmra.mxu1 %vm348_vm1, %v239_v43 }
  0xf9   : > { %v399_v44 = vpop.f32.mrf.mxu0 }
  0xfa   : > { %v440_v45 = vpop.f32.mrf.mxu1  ;;  %447 = vst [vmem:[%s232_s9] sm:$0xff] %v399_v44  ;;  %v456_v48 = vmul.f32 %v399_v44, %v399_v44 }
  0xfb   : > { %v401_v46 = vpop.f32.mrf.mxu0  ;;  %v458_v49 = vmul.f32 %v440_v45, %v440_v45  ;;  %449 = vst [vmem:[%s232_s9 + $0x10] sm:$0xff] %v440_v45 }
  0xfc   : > { %v442_v47 = vpop.f32.mrf.mxu1  ;;  %448 = vst [vmem:[%s232_s9 + $0x8] sm:$0xff] %v401_v46  ;;  %v451_v50 = vadd.f32 %v401_v46, %v399_v44  ;;  %v457_v51 = vmul.f32 %v401_v46, %v401_v46 }
  0xfd   : > { %v403_v52 = vpop.f32.mrf.mxu0  ;;  %450 = vst [vmem:[%s232_s9 + $0x18] sm:$0xff] %v442_v47  ;;  %v459_v60 = vmul.f32 %v442_v47, %v442_v47 }
  0xfe   : > { %v444_v53 = vpop.f32.mrf.mxu1  ;;  %v452_v54 = vadd.f32 %v451_v50, %v440_v45  ;;  %v460_v55 = vadd.f32 %v457_v51, %v456_v48 }
  0xff   : > { %v404_v56 = vpop.f32.mrf.mxu0 }
 0x100   : > { %v445_v57 = vpop.f32.mrf.mxu1  ;;  %v453_v58 = vadd.f32 %v452_v54, %v442_v47  ;;  %v461_v59 = vadd.f32 %v460_v55, %v458_v49 }
 0x102   : > { %454 = vadd.xlane.f32.xlu0 %v453_v58  ;;  %v462_v61 = vadd.f32 %v461_v59, %v459_v60 }
 0x106   : > { %463 = vadd.xlane.f32.xlu0 %v462_v61 }
 0x18b   : > { %v455_v62 = vpop.xlane.xlu0 %454 }
 0x18f   : > { %v464_v63 = vpop.xlane.xlu0 %463 }
 0x190   : > { %v466_v0 = vsel %vm465_vm2, %v455_v62, %v464_v63 }
 0x191   : > { %468 = vst.msk [vmem:[%s237_s14] sm:$0xff] %vm467_vm3, %v466_v0 }
 0x192 PF: > { %p11_p10 = scmp.ge.s32.totalorder %s718_s16, 4   ;;  %s804_s12 = smov %s672_s13 }
 0x193   : > { %s805_s13 = smov %s727_s19  ;;  %s806_s14 = smov %s718_s16 }
 0x194   :  { %13 = sbr.rel (!%p11_p10) target bundleno = 2 (0x2), region = 98 }

</bundles_post_ra>
